<compile_context>
chip_gen: v5e
topology: v5e:2x2
jax: 0.10.0
libtpu: 0.0.40
codegen_flags: <defaults>
</compile_context>

<pallas_src>
import functools

import jax
import jax.numpy as jnp
from jax.experimental import pallas as pl
from jax.experimental.pallas import tpu as pltpu

INPUT_SIZE = 256 + 32   # 288
H1, H2 = 128, 64
OUTPUT_SIZE = 2
W3_PAD = 128            # fc3 weight kept lane-padded in VMEM (resident, ~16 KiB)


def _round_up(n, m):
    return ((n + m - 1) // m) * m


def _cdiv(n, m):
    return (n + m - 1) // m


def _mlp_kernel(x_ref, w1_ref, b1_ref, w2_ref, b2_ref, w3_ref, b3_ref, o_ref):
    # x arrives f32; cast to bf16 in-kernel (avoids a separate XLA cast pass
    # over HBM in the wrapper).  All matmuls accumulate in f32 on the MXU.
    x = x_ref[...].astype(jnp.bfloat16)
    # fc1 + ReLU
    h1 = jnp.dot(x, w1_ref[...], preferred_element_type=jnp.float32)
    h1 = jnp.maximum(h1 + b1_ref[...], 0.0).astype(jnp.bfloat16)
    # fc2 + ReLU
    h2 = jnp.dot(h1, w2_ref[...], preferred_element_type=jnp.float32)
    h2 = jnp.maximum(h2 + b2_ref[...], 0.0).astype(jnp.bfloat16)
    # fc3: weights lane-padded to 128 cols (extra cols are zero); only the
    # first OUTPUT_SIZE columns are real and stored (o_ref is (tm, 2)).
    out = jnp.dot(h2, w3_ref[...], preferred_element_type=jnp.float32)
    o_ref[...] = (out[:, :OUTPUT_SIZE] + b3_ref[...]).astype(o_ref.dtype)


@functools.partial(jax.jit, static_argnames=("tile_m",))
def goal_forward(x, params, *, tile_m=1024):
    """x: [B, 288] float32 -> [B, 2] float32.

    Batch-tiled pipelined Pallas kernel; weights stay VMEM-resident across
    grid steps while batch tiles stream through the pipeline.
    """
    w1, b1, w2, b2, w3p, b3 = params
    B = x.shape[0]

    # Batch tile: as large as practical; >= 2 grid steps for big batches so
    # the "parallel" axis can shard across both TensorCores on v7x.
    tm = min(tile_m, _round_up(max(B, 8), 8))
    if B >= 512:
        tm = min(tm, _round_up(_cdiv(B, 2), 256))
    grid = (_cdiv(B, tm),)

    weight_bytes = ((w1.size + w2.size + w3p.size) * 2
                    + (b1.size + b2.size + b3.size) * 4)
    cost = pl.CostEstimate(
        flops=2 * B * (INPUT_SIZE * H1 + H1 * H2 + H2 * OUTPUT_SIZE),
        bytes_accessed=B * INPUT_SIZE * 4 + B * OUTPUT_SIZE * 4 + weight_bytes,
        transcendentals=0,
    )

    return pl.pallas_call(
        _mlp_kernel,
        out_shape=jax.ShapeDtypeStruct((B, OUTPUT_SIZE), jnp.float32),
        grid=grid,
        in_specs=[
            pl.BlockSpec((tm, INPUT_SIZE), lambda i: (i, 0)),    # x tile (streamed, f32)
            pl.BlockSpec((INPUT_SIZE, H1), lambda i: (0, 0)),    # w1 (resident)
            pl.BlockSpec((1, H1),          lambda i: (0, 0)),    # b1
            pl.BlockSpec((H1, H2),         lambda i: (0, 0)),    # w2
            pl.BlockSpec((1, H2),          lambda i: (0, 0)),    # b2
            pl.BlockSpec((H2, W3_PAD),     lambda i: (0, 0)),    # w3 (lane-padded, resident)
            pl.BlockSpec((1, OUTPUT_SIZE), lambda i: (0, 0)),    # b3
        ],
        out_specs=pl.BlockSpec((tm, OUTPUT_SIZE), lambda i: (i, 0)),
        compiler_params=pltpu.CompilerParams(
            dimension_semantics=("parallel",),
        ),
        cost_estimate=cost,
    )(x, w1, b1, w2, b2, w3p, b3)


def init_params(key):
    """Deterministic init mimicking nn.Linear default (uniform +/- 1/sqrt(fan_in)).

    Weights are [in, out] bf16 (intentional inference precision choice: bf16
    MXU operands, f32 accumulation); biases are [1, out] f32.  The final layer
    weight is lane-padded from 2 to 128 output columns (zeros) so the last MXU
    pass is uniform; only the first 2 columns are ever stored.
    """
    def linear(key, fan_in, fan_out):
        kw, kb = jax.random.split(key)
        bound = 1.0 / jnp.sqrt(fan_in)
        w = jax.random.uniform(kw, (fan_in, fan_out), jnp.float32, -bound, bound)
        b = jax.random.uniform(kb, (1, fan_out), jnp.float32, -bound, bound)
        return w, b

    k1, k2, k3 = jax.random.split(key, 3)
    w1, b1 = linear(k1, INPUT_SIZE, H1)
    w2, b2 = linear(k2, H1, H2)
    w3, b3 = linear(k3, H2, OUTPUT_SIZE)

    w3p = jnp.zeros((H2, W3_PAD), jnp.float32).at[:, :OUTPUT_SIZE].set(w3)

    return (
        w1.astype(jnp.bfloat16), b1,
        w2.astype(jnp.bfloat16), b2,
        w3p.astype(jnp.bfloat16), b3,
    )


def goal_reference(x, params):
    """Pure-JAX reference mirroring the kernel's bf16-operand / f32-accumulate math."""
    w1, b1, w2, b2, w3p, b3 = params
    x_bf = x.astype(jnp.bfloat16)
    h1 = jnp.maximum(
        jnp.dot(x_bf, w1, preferred_element_type=jnp.float32) + b1, 0.0
    ).astype(jnp.bfloat16)
    h2 = jnp.maximum(
        jnp.dot(h1, w2, preferred_element_type=jnp.float32) + b2, 0.0
    ).astype(jnp.bfloat16)
    out = jnp.dot(h2, w3p[:, :OUTPUT_SIZE], preferred_element_type=jnp.float32) + b3
    return out


if __name__ == "__main__":
    key = jax.random.PRNGKey(0)
    kx, kp = jax.random.split(key)
    params = init_params(kp)

    # Small batch (single grid step).
    B = 8
    x = jax.random.normal(kx, (B, INPUT_SIZE), jnp.float32)
    out = jax.block_until_ready(goal_forward(x, params))
    ref = goal_reference(x, params)
    assert out.shape == (B, OUTPUT_SIZE), out.shape
    assert jnp.allclose(out, ref, atol=1e-2, rtol=1e-2), "mismatch vs reference"

    # Larger, ragged batch: exercises the multi-step grid and the masked
    # boundary-block writeback (no jnp.pad in the wrapper).
    B2 = 1003
    x2 = jax.random.normal(jax.random.PRNGKey(1), (B2, INPUT_SIZE), jnp.float32)
    out2 = jax.block_until_ready(goal_forward(x2, params))
    ref2 = goal_reference(x2, params)
    assert out2.shape == (B2, OUTPUT_SIZE), out2.shape
    assert jnp.allclose(out2, ref2, atol=1e-2, rtol=1e-2), "mismatch vs reference (tiled)"

    print("KERNEL_OK")
</pallas_src>

<mosaic_0001>
module attributes {stable_mosaic.version = 11 : i64} {
  func.func @_mlp_kernel(%arg0: i32, %arg1: memref<8x288xf32, #tpu.memory_space<vmem>>, %arg2: memref<288x128xbf16, #tpu.memory_space<vmem>>, %arg3: memref<1x128xf32, #tpu.memory_space<vmem>>, %arg4: memref<128x64xbf16, #tpu.memory_space<vmem>>, %arg5: memref<1x64xf32, #tpu.memory_space<vmem>>, %arg6: memref<64x128xbf16, #tpu.memory_space<vmem>>, %arg7: memref<1x2xf32, #tpu.memory_space<vmem>>, %arg8: memref<8x2xf32, #tpu.memory_space<vmem>>) attributes {dimension_semantics = [#tpu.dimension_semantics<parallel>], iteration_bounds = array<i64: 1>, scalar_prefetch = 0 : i64, scratch_operands = 0 : i64, tpu.core_type = #tpu.core_type<tc>, window_params = [{transform_indices = @transform_0, window_bounds = array<i64: 8, 288>}, {pipeline_mode = #tpu.pipeline_mode<synchronous>, transform_indices = @transform_1, window_bounds = array<i64: 288, 128>}, {pipeline_mode = #tpu.pipeline_mode<synchronous>, transform_indices = @transform_2, window_bounds = array<i64: 1, 128>}, {pipeline_mode = #tpu.pipeline_mode<synchronous>, transform_indices = @transform_3, window_bounds = array<i64: 128, 64>}, {pipeline_mode = #tpu.pipeline_mode<synchronous>, transform_indices = @transform_4, window_bounds = array<i64: 1, 64>}, {pipeline_mode = #tpu.pipeline_mode<synchronous>, transform_indices = @transform_5, window_bounds = array<i64: 64, 128>}, {pipeline_mode = #tpu.pipeline_mode<synchronous>, transform_indices = @transform_6, window_bounds = array<i64: 1, 2>}, {transform_indices = @transform_7, window_bounds = array<i64: 8, 2>}]} {
    %c0 = arith.constant 0 : index
    %c0_0 = arith.constant 0 : index
    %0 = vector.load %arg1[%c0, %c0_0] : memref<8x288xf32, #tpu.memory_space<vmem>>, vector<8x288xf32>
    %1 = arith.truncf %0 : vector<8x288xf32> to vector<8x288xbf16>
    %c0_1 = arith.constant 0 : index
    %c0_2 = arith.constant 0 : index
    %2 = vector.load %arg2[%c0_1, %c0_2] : memref<288x128xbf16, #tpu.memory_space<vmem>>, vector<288x128xbf16>
    %cst = arith.constant dense<0.000000e+00> : vector<8x128xf32>
    %3 = tpu.matmul %1, %2, %cst {dimension_numbers = #tpu.dot_dimension_numbers<[1], [0], [0], [1], [0, 0, 1, 1], [], []>} : vector<8x288xbf16>, vector<288x128xbf16>, vector<8x128xf32> -> vector<8x128xf32>
    %c0_3 = arith.constant 0 : index
    %c0_4 = arith.constant 0 : index
    %4 = vector.load %arg3[%c0_3, %c0_4] : memref<1x128xf32, #tpu.memory_space<vmem>>, vector<1x128xf32>
    %5 = vector.broadcast %4 : vector<1x128xf32> to vector<8x128xf32>
    %6 = arith.addf %3, %5 : vector<8x128xf32>
    %cst_5 = arith.constant 0.000000e+00 : f32
    %7 = vector.broadcast %cst_5 : f32 to vector<8x128xf32>
    %8 = arith.maximumf %6, %7 : vector<8x128xf32>
    %9 = arith.truncf %8 : vector<8x128xf32> to vector<8x128xbf16>
    %c0_6 = arith.constant 0 : index
    %c0_7 = arith.constant 0 : index
    %10 = vector.load %arg4[%c0_6, %c0_7] : memref<128x64xbf16, #tpu.memory_space<vmem>>, vector<128x64xbf16>
    %cst_8 = arith.constant dense<0.000000e+00> : vector<8x64xf32>
    %11 = tpu.matmul %9, %10, %cst_8 {dimension_numbers = #tpu.dot_dimension_numbers<[1], [0], [0], [1], [0, 0, 1, 1], [], []>} : vector<8x128xbf16>, vector<128x64xbf16>, vector<8x64xf32> -> vector<8x64xf32>
    %c0_9 = arith.constant 0 : index
    %c0_10 = arith.constant 0 : index
    %12 = vector.load %arg5[%c0_9, %c0_10] : memref<1x64xf32, #tpu.memory_space<vmem>>, vector<1x64xf32>
    %13 = vector.broadcast %12 : vector<1x64xf32> to vector<8x64xf32>
    %14 = arith.addf %11, %13 : vector<8x64xf32>
    %cst_11 = arith.constant 0.000000e+00 : f32
    %15 = vector.broadcast %cst_11 : f32 to vector<8x64xf32>
    %16 = arith.maximumf %14, %15 : vector<8x64xf32>
    %17 = arith.truncf %16 : vector<8x64xf32> to vector<8x64xbf16>
    %c0_12 = arith.constant 0 : index
    %c0_13 = arith.constant 0 : index
    %18 = vector.load %arg6[%c0_12, %c0_13] : memref<64x128xbf16, #tpu.memory_space<vmem>>, vector<64x128xbf16>
    %cst_14 = arith.constant dense<0.000000e+00> : vector<8x128xf32>
    %19 = tpu.matmul %17, %18, %cst_14 {dimension_numbers = #tpu.dot_dimension_numbers<[1], [0], [0], [1], [0, 0, 1, 1], [], []>} : vector<8x64xbf16>, vector<64x128xbf16>, vector<8x128xf32> -> vector<8x128xf32>
    %20 = vector.extract_strided_slice %19 {offsets = [0, 0], sizes = [8, 2], strides = [1, 1]} : vector<8x128xf32> to vector<8x2xf32>
    %c0_15 = arith.constant 0 : index
    %c0_16 = arith.constant 0 : index
    %21 = vector.load %arg7[%c0_15, %c0_16] : memref<1x2xf32, #tpu.memory_space<vmem>>, vector<1x2xf32>
    %22 = vector.broadcast %21 : vector<1x2xf32> to vector<8x2xf32>
    %23 = arith.addf %20, %22 : vector<8x2xf32>
    %c0_17 = arith.constant 0 : index
    %c0_18 = arith.constant 0 : index
    %24 = vector.load %arg8[%c0_17, %c0_18] : memref<8x2xf32, #tpu.memory_space<vmem>>, vector<8x2xf32>
    tpu.vector_store %arg8[%c0_17, %c0_18], %23 {strides = array<i32>} : memref<8x2xf32, #tpu.memory_space<vmem>>, vector<8x2xf32>,
    return
  }
  func.func @transform_0(%arg0: i32) -> (i32, i32) {
    %c0_i32 = arith.constant 0 : i32
    %c0_i32_0 = arith.constant 0 : i32
    return %arg0, %c0_i32 : i32, i32
  }
  func.func @transform_1(%arg0: i32) -> (i32, i32) {
    %c0_i32 = arith.constant 0 : i32
    %c0_i32_0 = arith.constant 0 : i32
    %c0_i32_1 = arith.constant 0 : i32
    return %c0_i32, %c0_i32_0 : i32, i32
  }
  func.func @transform_2(%arg0: i32) -> (i32, i32) {
    %c0_i32 = arith.constant 0 : i32
    %c0_i32_0 = arith.constant 0 : i32
    %c0_i32_1 = arith.constant 0 : i32
    return %c0_i32, %c0_i32_0 : i32, i32
  }
  func.func @transform_3(%arg0: i32) -> (i32, i32) {
    %c0_i32 = arith.constant 0 : i32
    %c0_i32_0 = arith.constant 0 : i32
    %c0_i32_1 = arith.constant 0 : i32
    return %c0_i32, %c0_i32_0 : i32, i32
  }
  func.func @transform_4(%arg0: i32) -> (i32, i32) {
    %c0_i32 = arith.constant 0 : i32
    %c0_i32_0 = arith.constant 0 : i32
    %c0_i32_1 = arith.constant 0 : i32
    return %c0_i32, %c0_i32_0 : i32, i32
  }
  func.func @transform_5(%arg0: i32) -> (i32, i32) {
    %c0_i32 = arith.constant 0 : i32
    %c0_i32_0 = arith.constant 0 : i32
    %c0_i32_1 = arith.constant 0 : i32
    return %c0_i32, %c0_i32_0 : i32, i32
  }
  func.func @transform_6(%arg0: i32) -> (i32, i32) {
    %c0_i32 = arith.constant 0 : i32
    %c0_i32_0 = arith.constant 0 : i32
    %c0_i32_1 = arith.constant 0 : i32
    return %c0_i32, %c0_i32_0 : i32, i32
  }
  func.func @transform_7(%arg0: i32) -> (i32, i32) {
    %c0_i32 = arith.constant 0 : i32
    %c0_i32_0 = arith.constant 0 : i32
    return %arg0, %c0_i32 : i32, i32
  }
}

</mosaic_0001>

<bundles_post_ra>
// kernel: goal_forward.1
= control target key start
LH: loop header
LB: loop body
LE: loop exit
PB: predicated region body
PF: predicated region fallthrough
CT: control target
= control target key end

     0   :  { %12 = vsyncpa [#allocation3], 0  ;;  %s570_s27 = smov [#allocation2]   ;;  %s571_s29 = smov 64   ;;  %s673_s0 = inlined_call_operand.vmem [shape: f32[8,288], index: 0, kind: input, shape index: {}]   ;;  %s674_s1 = inlined_call_operand.hbm [shape: bf16[288,128], index: 1, kind: input, shape index: {}]   ;;  %s675_s2 = inlined_call_operand.vmem [shape: f32[1,128], index: 2, kind: input, shape index: {}]   ;;  %s676_s3 = inlined_call_operand.vmem [shape: bf16[128,64], index: 3, kind: input, shape index: {}]   ;;  %s677_s4 = inlined_call_operand.vmem [shape: f32[1,64], index: 4, kind: input, shape index: {}]   ;;  %s678_s5 = inlined_call_operand.vmem [shape: bf16[64,128], index: 5, kind: input, shape index: {}]   ;;  %s679_s6 = inlined_call_operand.vmem [shape: f32[1,2], index: 6, kind: input, shape index: {}]   ;;  %s680_s7 = inlined_call_operand.vmem [shape: f32[8,2], index: 7, kind: output, shape index: {}]  }
   0x1   :  { %s19_s26 = sshll.u32 %s674_s1, 4  ;;  %s21_s28 = sshll.u32 %s570_s27, 4  ;;  %s20_s26 = int_to_ptr.hbm [resolvable:$true] %s19_s26  ;;  %s22_s28 = int_to_ptr.vmem [resolvable:$true] %s21_s28 }
   0x2   :  { %s572_s30 = smov 4  }
   0x3   :  { %27 = dma.hbm_to_vmem [thread:$0]  %s20_s26, 2304, %s22_s28, [#allocation3], %s571_s29, %s571_s29, %s572_s30  }
   0x4   :  { %568 = dma.done.wait [#allocation3], 2304  }
   0x5   :  { %569 = vsyncadd [#allocation3], 4294964992  ;;  %v515_v0 = vld [vmem:[#allocation2 + $0x38] sm:$0xff]  ;;  %v514_v2 = vld [vmem:[#allocation2 + $0x30] sm:$0xff]  ;;  %vm197_vm0 = vcmask 261120   ;;  %vm357_vm1 = vcmask 523264  }
   0x6   :  { %v523_v1 = vld [vmem:[#allocation2 + $0x78] sm:$0xff]  ;;  %201 = vmatpush.bf16.msra.mxu0 %v515_v0  ;;  %v522_v3 = vld [vmem:[#allocation2 + $0x70] sm:$0xff]  ;;  %v525_v4 = vld [vmem:[#allocation2 + $0x88] sm:$0xff]  ;;  %vm379_vm2 = vcmask 15360  }
   0x7   :  { %214 = vmatpush.bf16.msra.mxu1 %v523_v1  ;;  %233 = vmatpush.bf16.msra.mxu2 %v525_v4  ;;  %v524_v5 = vld [vmem:[#allocation2 + $0x80] sm:$0xff]  ;;  %v45_v6 = vld [vmem:[%s673_s0 + $0x10] sm:$0xff]  ;;  %v513_v7 = vld [vmem:[#allocation2 + $0x28] sm:$0xff] }
   0x8   :  { %v521_v8 = vld [vmem:[#allocation2 + $0x68] sm:$0xff]  ;;  %v48_v9 = vpack.c.bf16 %v45_v6, %v45_v6  ;;  %v533_v10 = vld [vmem:[%s676_s3 + $0x38] sm:$0xff]  ;;  %v532_v11 = vld [vmem:[%s676_s3 + $0x30] sm:$0xff] }
   0x9   :  { %310 = vmatpush.bf16.msra.mxu3 %v533_v10  ;;  %v512_v12 = vld [vmem:[#allocation2 + $0x20] sm:$0xff]  ;;  %v531_v14 = vld [vmem:[%s676_s3 + $0x28] sm:$0xff]  ;;  %v511_v15 = vld [vmem:[#allocation2 + $0x18] sm:$0xff] }
   0xa   :  { %202 = vmatpush.bf16.msra.mxu0 %v514_v2  ;;  %v520_v13 = vld [vmem:[#allocation2 + $0x60] sm:$0xff]  ;;  %v519_v16 = vld [vmem:[#allocation2 + $0x58] sm:$0xff]  ;;  %v510_v18 = vld [vmem:[#allocation2 + $0x10] sm:$0xff] }
   0xb   :  { %215 = vmatpush.bf16.msra.mxu1 %v522_v3  ;;  %234 = vmatpush.bf16.msra.mxu2 %v524_v5  ;;  %v530_v17 = vld [vmem:[%s676_s3 + $0x20] sm:$0xff]  ;;  %v518_v19 = vld [vmem:[#allocation2 + $0x50] sm:$0xff]  ;;  %v509_v20 = vld [vmem:[#allocation2 + $0x8] sm:$0xff] }
   0xc   :  { %v517_v21 = vld [vmem:[#allocation2 + $0x48] sm:$0xff]  ;;  %v508_v22 = vld [vmem:[#allocation2] sm:$0xff]  ;;  %v529_v28 = vld [vmem:[%s676_s3 + $0x18] sm:$0xff] }
   0xd   :  { %311 = vmatpush.bf16.msra.mxu3 %v532_v11  ;;  %v516_v23 = vld [vmem:[#allocation2 + $0x40] sm:$0xff]  ;;  %v44_v25 = vld [vmem:[%s673_s0 + $0x8] sm:$0xff]  ;;  %v528_v29 = vld [vmem:[%s676_s3 + $0x10] sm:$0xff] }
   0xe   :  { %203 = vmatpush.bf16.msra.mxu0 %v513_v7  ;;  %458 = vmatmul.msk.bf16.vlgmr.msra.gmra.mxu2 %vm197_vm0, %v48_v9  ;;  %v43_v24 = vld [vmem:[%s673_s0] sm:$0xff]  ;;  %v47_v27 = vpack.c.bf16 %v44_v25, %v44_v25  ;;  %v527_v30 = vld [vmem:[%s676_s3 + $0x8] sm:$0xff]  ;;  %v537_v32 = vld [vmem:[%s678_s5 + $0x18] sm:$0xff] }
   0xf   :  { %216 = vmatpush.bf16.msra.mxu1 %v521_v8  ;;  %v46_v26 = vpack.c.bf16 %v43_v24, %v43_v24  ;;  %v526_v31 = vld [vmem:[%s676_s3] sm:$0xff]  ;;  %365 = vmatpush.bf16.msrb.mxu2 %v537_v32  ;;  %v536_v33 = vld [vmem:[%s678_s5 + $0x10] sm:$0xff]  ;;  %v535_v35 = vld [vmem:[%s678_s5 + $0x8] sm:$0xff] }
  0x10   :  { %v541_v37 = vld [vmem:[%s675_s2] ss:$0 sm:$0xff] }
  0x11   :  { %312 = vmatpush.bf16.msra.mxu3 %v531_v14  ;;  %v534_v47 = vld [vmem:[%s678_s5] sm:$0xff] }
  0x12   :  { %204 = vmatpush.bf16.msra.mxu0 %v512_v12  ;;  %v542_v48 = vld [vmem:[%s677_s4] ss:$0 sm:$0xff] }
  0x13   :  { %217 = vmatpush.bf16.msra.mxu1 %v520_v13  ;;  %366 = vmatpush.bf16.msrb.mxu2 %v536_v33  ;;  %v543_v54 = vld [vmem:[%s679_s6] ss:$0 sm:$0xff] }
  0x15   :  { %313 = vmatpush.bf16.msra.mxu3 %v530_v17 }
  0x16   :  { %205 = vmatpush.bf16.msra.mxu0 %v511_v15 }
  0x17   :  { %218 = vmatpush.bf16.msra.mxu1 %v519_v16  ;;  %367 = vmatpush.bf16.msrb.mxu2 %v535_v35 }
  0x19   :  { %314 = vmatpush.bf16.msra.mxu3 %v529_v28 }
  0x1a   :  { %206 = vmatpush.bf16.msra.mxu0 %v510_v18 }
  0x1b   :  { %219 = vmatpush.bf16.msra.mxu1 %v518_v19  ;;  %368 = vmatpush.bf16.msrb.mxu2 %v534_v47 }
  0x1d   :  { %315 = vmatpush.bf16.msra.mxu3 %v528_v29 }
  0x1e   :  { %207 = vmatpush.bf16.msra.mxu0 %v509_v20 }
  0x1f   :  { %220 = vmatpush.bf16.msra.mxu1 %v517_v21 }
  0x21   :  { %316 = vmatpush.bf16.msra.mxu3 %v527_v30 }
  0x22   :  { %208 = vmatpush.bf16.msra.mxu0 %v508_v22 }
  0x23   :  { %221 = vmatpush.bf16.msra.mxu1 %v516_v23 }
  0x25   :  { %209 = vmatmul.bf16.vlgmr.msra.gmra.mxu0 %v46_v26  ;;  %317 = vmatpush.bf16.msra.mxu3 %v526_v31 }
  0x26   :  { %222 = vmatmul.bf16.vlgmr.msra.gmra.mxu1 %v47_v27 }
  0x91   :  { %v236_v34 = vpop.f32.mrf.mxu2 }
  0x99   :  { %v238_v36 = vpop.f32.mrf.mxu2 }
  0xa2   :  { %v210_v38 = vpop.f32.mrf.mxu0 }
  0xa3   :  { %v223_v39 = vpop.f32.mrf.mxu1  ;;  %v211_v40 = vadd.f32 %v541_v37, %v210_v38 }
  0xa5   :  { %v224_v41 = vadd.f32 %v223_v39, %v211_v40 }
  0xa7   :  { %v237_v42 = vadd.f32 %v236_v34, %v224_v41 }
  0xa9   :  { %v240_v43 = vmax.f32 %v237_v42, 0.0 }
  0xaa   :  { %v212_v44 = vpop.f32.mrf.mxu0 }
  0xab   :  { %v225_v45 = vpop.f32.mrf.mxu1  ;;  %v241_v46 = vpack.c.bf16 %v240_v43, %v240_v43 }
  0xad   :  { %318 = vmatmul.bf16.vlgmr.msra.gmra.mxu3 %v241_v46 }
 0x130   :  { %v319_v49 = vpop.f32.mrf.mxu3 }
 0x131   :  { %v320_v50 = vadd.f32 %v542_v48, %v319_v49 }
 0x133   :  { %v323_v51 = vmax.f32 %v320_v50, 0.0 }
 0x135   :  { %v324_v52 = vpack.c.bf16 %v323_v51, %v323_v51 }
 0x137   :  { %507 = vmatmul.msk.bf16.vlgmr.msrb.gmra.mxu2 %vm357_vm1, %v324_v52 }
 0x138   :  { %v321_v53 = vpop.f32.mrf.mxu3 }
 0x1ba   :  { %v370_v55 = vpop.f32.mrf.mxu2 }
 0x1bb   :  { %v378_v56 = vadd.f32 %v543_v54, %v370_v55 }
 0x1bd   :  { %380 = vst.msk [vmem:[%s680_s7] sm:$0xff] %vm379_vm2, %v378_v56 }
 0x1c2   :  { %v372_v57 = vpop.f32.mrf.mxu2 }
 0x1c3   :  { %385 = vsyncpa [#allocation3], 1 }

</bundles_post_ra>
